<compile_context>
chip_gen: v7x
topology: tpu7x:2x2x1
jax: 0.10.0
libtpu: 0.0.40
codegen_flags: <defaults>
</compile_context>

<pallas_src>
import functools

import jax
import jax.numpy as jnp
from jax.experimental import pallas as pl
from jax.experimental.pallas import tpu as pltpu


def _masked_mse_kernel(pred_ref, target_ref, mask_ref, psq_ref, pm_ref, *,
                       n_rows, n_cols, mask_rows, mask_cols):
    # Load native-dtype tiles and cast in-kernel (free-ish on the VPU).
    p = pred_ref[...].astype(jnp.float32)
    t = target_ref[...].astype(jnp.float32)
    m = mask_ref[...].astype(jnp.float32)
    tb, ts = p.shape

    # Validity mask for ragged edge blocks; only traced when a tail exists.
    valid = None
    if mask_rows:
        r = jax.lax.broadcasted_iota(jnp.int32, (tb, ts), 0) + pl.program_id(0) * tb
        valid = r < n_rows
    if mask_cols:
        c = jax.lax.broadcasted_iota(jnp.int32, (tb, ts), 1) + pl.program_id(1) * ts
        cv = c < n_cols
        valid = cv if valid is None else (valid & cv)

    if valid is not None:
        m = jnp.where(valid, m, 0.0)          # tail contributes 0 to denominator

    d = p * m - t                             # only pred is masked (matches module)
    if valid is not None:
        d = jnp.where(valid, d, 0.0)          # tail contributes 0 to numerator
                                              # (also squashes NaN/inf garbage)

    s_sq = jnp.sum(d * d, keepdims=True)      # (1, 1) f32
    s_m = jnp.sum(m, keepdims=True)           # (1, 1) f32

    # Lane-dense per-tile partials (unmasked vst); consumer reads [..., 0, 0].
    psq_ref[...] = jnp.broadcast_to(s_sq.reshape(1, 1, 1, 1), psq_ref.shape)
    pm_ref[...] = jnp.broadcast_to(s_m.reshape(1, 1, 1, 1), pm_ref.shape)


def masked_mse_pallas(pred, target, mask, *, row_tile=None, col_tile=None):
    """pred, target, mask: same shape (batch, seq_len), any float dtype -> scalar."""
    assert pred.shape == target.shape == mask.shape
    if pred.ndim != 2:
        pred = pred.reshape(pred.shape[0], -1)
        target = target.reshape(target.shape[0], -1)
        mask = mask.reshape(mask.shape[0], -1)
    B, S = pred.shape

    # ---- tile selection (blocks must be 8/128-multiples or the full dim) ----
    if col_tile is None:
        col_tile = S if S <= 512 else 512
    if row_tile is None:
        bytes_per_row = col_tile * (pred.dtype.itemsize + target.dtype.itemsize
                                    + mask.dtype.itemsize)
        budget = 6 * 1024 * 1024              # inputs per pipeline buffer
        row_tile = max(8, min(4096, budget // max(bytes_per_row, 1)))
        row_tile = (row_tile // 8) * 8
        if row_tile >= B:
            row_tile = B
    assert col_tile == S or col_tile % 128 == 0
    assert row_tile == B or row_tile % 8 == 0

    gi = pl.cdiv(B, row_tile)
    gj = pl.cdiv(S, col_tile)

    kernel = functools.partial(
        _masked_mse_kernel,
        n_rows=B, n_cols=S,
        mask_rows=(B % row_tile != 0),
        mask_cols=(S % col_tile != 0),
    )

    partial_sq, partial_m = pl.pallas_call(
        kernel,
        out_shape=(
            jax.ShapeDtypeStruct((gi, gj, 8, 128), jnp.float32),
            jax.ShapeDtypeStruct((gi, gj, 8, 128), jnp.float32),
        ),
        grid_spec=pltpu.PrefetchScalarGridSpec(
            num_scalar_prefetch=0,
            grid=(gi, gj),
            in_specs=[
                pl.BlockSpec((row_tile, col_tile), lambda i, j: (i, j)),
                pl.BlockSpec((row_tile, col_tile), lambda i, j: (i, j)),
                pl.BlockSpec((row_tile, col_tile), lambda i, j: (i, j)),
            ],
            out_specs=(
                pl.BlockSpec((1, 1, 8, 128), lambda i, j: (i, j, 0, 0)),
                pl.BlockSpec((1, 1, 8, 128), lambda i, j: (i, j, 0, 0)),
            ),
        ),
        compiler_params=pltpu.CompilerParams(
            dimension_semantics=("parallel", "parallel"),
            vmem_limit_bytes=32 * 1024 * 1024,
        ),
    )(pred, target, mask)

    # Tiny final reduction + divide in plain JAX (one scalar per tile).
    total_sq = jnp.sum(partial_sq[:, :, 0, 0])
    total_m = jnp.sum(partial_m[:, :, 0, 0])
    return total_sq / total_m


def masked_mse_ref(pred, target, mask):
    p = pred.astype(jnp.float32)
    t = target.astype(jnp.float32)
    m = mask.astype(jnp.float32)
    return jnp.sum((p * m - t) ** 2) / jnp.sum(m)


if __name__ == "__main__":
    key = jax.random.PRNGKey(0)
    k_pred, k_target, k_mask = jax.random.split(key, 3)

    # Small shapes consistent with the module's batch*seq_len inputs.
    batch, seq_len = 2, 8
    pred = jax.random.normal(k_pred, (batch, seq_len), dtype=jnp.float32)
    target = jax.random.normal(k_target, (batch, seq_len), dtype=jnp.float32)
    mask = (jax.random.uniform(k_mask, (batch, seq_len)) < 0.7).astype(jnp.float32)
    mask = mask.at[0, 0].set(1.0)   # guarantee sum(mask) > 0

    out = masked_mse_pallas(pred, target, mask)
    out = jax.block_until_ready(out)
    ref = masked_mse_ref(pred, target, mask)
    assert jnp.allclose(out, ref, rtol=1e-5, atol=1e-5), (out, ref)

    # Also exercise the tiled path with ragged row/col edge blocks.
    k2p, k2t, k2m = jax.random.split(jax.random.PRNGKey(1), 3)
    B2, S2 = 20, 200
    pred2 = jax.random.normal(k2p, (B2, S2), dtype=jnp.float32)
    target2 = jax.random.normal(k2t, (B2, S2), dtype=jnp.float32)
    mask2 = (jax.random.uniform(k2m, (B2, S2)) < 0.5).astype(jnp.float32)
    mask2 = mask2.at[0, 0].set(1.0)
    out2 = masked_mse_pallas(pred2, target2, mask2, row_tile=8, col_tile=128)
    out2 = jax.block_until_ready(out2)
    ref2 = masked_mse_ref(pred2, target2, mask2)
    assert jnp.allclose(out2, ref2, rtol=1e-5, atol=1e-5), (out2, ref2)

    print("KERNEL_OK")
</pallas_src>

<mosaic_0001>
module attributes {stable_mosaic.version = 11 : i64} {
  func.func @_masked_mse_kernel(%arg0: i32, %arg1: i32, %arg2: memref<2x8xf32, #tpu.memory_space<vmem>>, %arg3: memref<2x8xf32, #tpu.memory_space<vmem>>, %arg4: memref<2x8xf32, #tpu.memory_space<vmem>>, %arg5: memref<1x1x8x128xf32, #tpu.memory_space<vmem>>, %arg6: memref<1x1x8x128xf32, #tpu.memory_space<vmem>>) attributes {dimension_semantics = [#tpu.dimension_semantics<parallel>, #tpu.dimension_semantics<parallel>], iteration_bounds = array<i64: 1, 1>, scalar_prefetch = 0 : i64, scratch_operands = 0 : i64, tpu.core_type = #tpu.core_type<tc>, window_params = [{transform_indices = @transform_0, window_bounds = array<i64: 2, 8>}, {transform_indices = @transform_1, window_bounds = array<i64: 2, 8>}, {transform_indices = @transform_2, window_bounds = array<i64: 2, 8>}, {transform_indices = @transform_3, window_bounds = array<i64: 1, 1, 8, 128>}, {transform_indices = @transform_4, window_bounds = array<i64: 1, 1, 8, 128>}]} {
    %c0 = arith.constant 0 : index
    %c0_0 = arith.constant 0 : index
    %0 = vector.load %arg2[%c0, %c0_0] : memref<2x8xf32, #tpu.memory_space<vmem>>, vector<2x8xf32>
    %c0_1 = arith.constant 0 : index
    %c0_2 = arith.constant 0 : index
    %1 = vector.load %arg3[%c0_1, %c0_2] : memref<2x8xf32, #tpu.memory_space<vmem>>, vector<2x8xf32>
    %c0_3 = arith.constant 0 : index
    %c0_4 = arith.constant 0 : index
    %2 = vector.load %arg4[%c0_3, %c0_4] : memref<2x8xf32, #tpu.memory_space<vmem>>, vector<2x8xf32>
    %3 = arith.mulf %0, %2 : vector<2x8xf32>
    %4 = arith.subf %3, %1 : vector<2x8xf32>
    %5 = arith.mulf %4, %4 : vector<2x8xf32>
    %6 = vector.shape_cast %5 : vector<2x8xf32> to vector<1x2x8xf32>
    %cst = arith.constant dense<0.000000e+00> : vector<1xf32>
    %7 = vector.multi_reduction <add>, %6, %cst [1, 2] : vector<1x2x8xf32> to vector<1xf32>
    %8 = vector.shape_cast %7 : vector<1xf32> to vector<1x1x1xf32>
    %9 = vector.extract %8[0, 0, 0] : f32 from vector<1x1x1xf32>
    %10 = vector.broadcast %9 : f32 to vector<1x1xf32>
    %11 = vector.shape_cast %2 : vector<2x8xf32> to vector<1x2x8xf32>
    %cst_5 = arith.constant dense<0.000000e+00> : vector<1xf32>
    %12 = vector.multi_reduction <add>, %11, %cst_5 [1, 2] : vector<1x2x8xf32> to vector<1xf32>
    %13 = vector.shape_cast %12 : vector<1xf32> to vector<1x1x1xf32>
    %14 = vector.extract %13[0, 0, 0] : f32 from vector<1x1x1xf32>
    %15 = vector.broadcast %14 : f32 to vector<1x1xf32>
    %16 = vector.shape_cast %10 : vector<1x1xf32> to vector<1x1x1x1xf32>
    %17 = vector.shape_cast %16 : vector<1x1x1x1xf32> to vector<1x1x1x1xf32>
    %18 = vector.broadcast %17 : vector<1x1x1x1xf32> to vector<1x1x8x128xf32>
    %c0_6 = arith.constant 0 : index
    %c0_7 = arith.constant 0 : index
    %c0_8 = arith.constant 0 : index
    %c0_9 = arith.constant 0 : index
    %19 = vector.load %arg5[%c0_6, %c0_7, %c0_8, %c0_9] : memref<1x1x8x128xf32, #tpu.memory_space<vmem>>, vector<1x1x8x128xf32>
    tpu.vector_store %arg5[%c0_6, %c0_7, %c0_8, %c0_9], %18 {strides = array<i32>} : memref<1x1x8x128xf32, #tpu.memory_space<vmem>>, vector<1x1x8x128xf32>,
    %20 = vector.shape_cast %15 : vector<1x1xf32> to vector<1x1x1x1xf32>
    %21 = vector.shape_cast %20 : vector<1x1x1x1xf32> to vector<1x1x1x1xf32>
    %22 = vector.broadcast %21 : vector<1x1x1x1xf32> to vector<1x1x8x128xf32>
    %c0_10 = arith.constant 0 : index
    %c0_11 = arith.constant 0 : index
    %c0_12 = arith.constant 0 : index
    %c0_13 = arith.constant 0 : index
    %23 = vector.load %arg6[%c0_10, %c0_11, %c0_12, %c0_13] : memref<1x1x8x128xf32, #tpu.memory_space<vmem>>, vector<1x1x8x128xf32>
    tpu.vector_store %arg6[%c0_10, %c0_11, %c0_12, %c0_13], %22 {strides = array<i32>} : memref<1x1x8x128xf32, #tpu.memory_space<vmem>>, vector<1x1x8x128xf32>,
    return
  }
  func.func @transform_0(%arg0: i32, %arg1: i32) -> (i32, i32) {
    %c0_i32 = arith.constant 0 : i32
    return %arg0, %arg1 : i32, i32
  }
  func.func @transform_1(%arg0: i32, %arg1: i32) -> (i32, i32) {
    %c0_i32 = arith.constant 0 : i32
    return %arg0, %arg1 : i32, i32
  }
  func.func @transform_2(%arg0: i32, %arg1: i32) -> (i32, i32) {
    %c0_i32 = arith.constant 0 : i32
    return %arg0, %arg1 : i32, i32
  }
  func.func @transform_3(%arg0: i32, %arg1: i32) -> (i32, i32, i32, i32) {
    %c0_i32 = arith.constant 0 : i32
    %c0_i32_0 = arith.constant 0 : i32
    %c0_i32_1 = arith.constant 0 : i32
    return %arg0, %arg1, %c0_i32, %c0_i32_0 : i32, i32, i32, i32
  }
  func.func @transform_4(%arg0: i32, %arg1: i32) -> (i32, i32, i32, i32) {
    %c0_i32 = arith.constant 0 : i32
    %c0_i32_0 = arith.constant 0 : i32
    %c0_i32_1 = arith.constant 0 : i32
    return %arg0, %arg1, %c0_i32, %c0_i32_0 : i32, i32, i32, i32
  }
}

</mosaic_0001>

<bundles_post_ra>
// kernel: tpu_custom_call.1
= control target key start
LH: loop header
LB: loop body
LE: loop exit
PB: predicated region body
PF: predicated region fallthrough
CT: control target
= control target key end

     0   :  { %10 = vsyncpa [#allocation3], 0  ;;  %s239_s0 = inlined_call_operand.hbm [shape: f32[2,8], index: 0, kind: input, shape index: {}]   ;;  %s240_s1 = inlined_call_operand.vmem [shape: f32[2,8], index: 1, kind: input, shape index: {}]   ;;  %s241_s2 = inlined_call_operand.vmem [shape: f32[2,8], index: 2, kind: input, shape index: {}]   ;;  %s242_s3 = inlined_call_operand.hbm [shape: f32[1,1,8,128], index: 3, kind: output, shape index: {0}]   ;;  %s243_s4 = inlined_call_operand.hbm [shape: f32[1,1,8,128], index: 4, kind: output, shape index: {1}]  }
   0x1   :  { %11 = vsyncpa [#allocation4], 0 }
   0x2   :  { %12 = vsyncpa [#allocation7], 0  ;;  %s169_s15 = smov [#allocation2]   ;;  %s97_s19 = scalar_lea.hbm %s239_s0, 32 }
   0x3   :  { %s19_s16 = sshll.u32 %s169_s15, 4  ;;  %p98_p0 = scmp.ne.s32.totalorder %s239_s0, %s97_s19  ;;  %s20_s16 = int_to_ptr.vmem [resolvable:$true] %s19_s16 }
   0x4   :  { %p101_p1 = scmp.lt.u32.totalorder %s97_s19, %s239_s0 }
   0x6   :  { %p103_p2 = pnand %p101_p1, %p98_p0 }
   0x8   :  { %106 = shalt.err (!%p103_p2)
}
   0x9   :  { %s107_s24 = scalar_lea.vmem %s20_s16, 32  ;;  %p112_p4 = scmp.lt.s32.totalorder %s20_s16, %s20_s16 }
   0xa   :  { %p108_p3 = scmp.ne.s32.totalorder %s20_s16, %s107_s24  ;;  %p113_p5 = scmp.lt.s32.totalorder %s107_s24, %s107_s24 }
   0xc   :  { %p114_p6 = por %p113_p5, %p112_p4 }
   0xe   :  { %p115_p7 = pnand %p114_p6, %p108_p3 }
  0x10   :  { %118 = shalt.err (!%p115_p7)
}
  0x11   :  { %22 = dma.hbm_to_vmem [thread:$0]  %s239_s0, 32, %s20_s16, [#allocation3]  }
  0x12   :  { %163 = dma.done.wait [#allocation3], 32  }
  0x13   :  { %164 = vsyncadd [#allocation3], 4294967264  ;;  %v30_v0 = vld [vmem:[#allocation2] sm:$0x3]  ;;  %vm36_vm0 = vcmask 58368   ;;  %s170_s0 = smov [#allocation5]  }
  0x14   :  { %v31_v1 = vld [vmem:[%s240_s1] sm:$0x3]  ;;  %s67_s1 = sshll.u32 %s170_s0, 4  ;;  %s171_s5 = smov [#allocation6]   ;;  %s68_s1 = int_to_ptr.vmem [resolvable:$true] %s67_s1 }
  0x15   :  { %v32_v2 = vld [vmem:[%s241_s2] sm:$0x3]  ;;  %s77_s6 = sshll.u32 %s171_s5, 4  ;;  %s119_s7 = scalar_lea.vmem %s68_s1, 128  ;;  %s78_s6 = int_to_ptr.vmem [resolvable:$true] %s77_s6 }
  0x16   :  { %v33_v3 = vmul.f32 %v32_v2, %v30_v0  ;;  %v47_v7 = vsel %vm36_vm0, %v32_v2, 0.0  ;;  %p120_p8 = scmp.ne.s32.totalorder %s68_s1, %s119_s7  ;;  %p124_p9 = scmp.lt.s32.totalorder %s68_s1, %s68_s1 }
  0x17   :  { %p125_p10 = scmp.lt.s32.totalorder %s119_s7, %s119_s7 }
  0x18   :  { %v34_v4 = vsub.f32 %v33_v3, %v31_v1 }
  0x19   :  { %p126_p11 = por %p125_p10, %p124_p9 }
  0x1a   :  { %v35_v5 = vmul.f32 %v34_v4, %v34_v4 }
  0x1b   :  { %p127_p12 = pnand %p126_p11, %p120_p8 }
  0x1c   :  { %v37_v6 = vsel %vm36_vm0, %v35_v5, 0.0 }
  0x1d   :  { %38 = vadd.xlane.f32.xlu0 %v37_v6 }
  0x21   :  { %48 = vadd.xlane.f32.xlu0 %v47_v7 }
  0xaa   :  { %v39_v8 = vpop.xlane.xlu0 %38 }
  0xab   :  { %v40_v9 = vrot.slane %v39_v8, 4 }
  0xad   :  { %v41_v10 = vadd.f32 %v40_v9, %v39_v8 }
  0xae   :  { %v49_v11 = vpop.xlane.xlu0 %48 }
  0xaf   :  { %v42_v12 = vrot.slane %v41_v10, 2  ;;  %v50_v13 = vrot.slane %v49_v11, 4 }
  0xb1   :  { %v51_v14 = vadd.f32 %v50_v13, %v49_v11  ;;  %v43_v15 = vadd.f32 %v42_v12, %v41_v10 }
  0xb3   :  { %v52_v16 = vrot.slane %v51_v14, 2  ;;  %v44_v17 = vrot.slane %v43_v15, 1 }
  0xb5   :  { %v53_v18 = vadd.f32 %v52_v16, %v51_v14  ;;  %v45_v19 = vadd.f32 %v44_v17, %v43_v15 }
  0xb7   :  { %90 = vpush %v45_v19  ;;  %v54_v20 = vrot.slane %v53_v18, 1 }
  0xb9   :  { %v55_v21 = vadd.f32 %v54_v20, %v53_v18 }
  0xbb   :  { %92 = vpush %v55_v21 }
  0xe8   :  { %s91_s2 = spop %90 }
  0xe9   :  { %v57_v22 = vstv %s91_s2 }
  0xea   :  { %58 = vst [vmem:[#allocation5] sm:$0xff] %v57_v22 }
  0xeb   :  { %130 = shalt.err (!%p127_p12)
}
  0xec   :  { %s131_s10 = scalar_lea.hbm %s242_s3, 128 }
  0xed   :  { %p132_p13 = scmp.ne.s32.totalorder %s242_s3, %s131_s10  ;;  %p135_p0 = scmp.lt.u32.totalorder %s131_s10, %s242_s3 }
  0xef   :  { %p137_p1 = pnand %p135_p0, %p132_p13 }
  0xf1   :  { %140 = shalt.err (!%p137_p1)
}
  0xf2   :  { %70 = dma.vmem_to_hbm [thread:$0]  %s68_s1, 128, %s242_s3, [#allocation4]  }
  0xf3   :  { %s93_s17 = spop %92  ;;  %s141_s18 = scalar_lea.vmem %s78_s6, 128 }
  0xf4   :  { %v59_v23 = vstv %s93_s17  ;;  %p142_p2 = scmp.ne.s32.totalorder %s78_s6, %s141_s18  ;;  %p146_p3 = scmp.lt.s32.totalorder %s78_s6, %s78_s6 }
  0xf5   :  { %60 = vst [vmem:[#allocation6] sm:$0xff] %v59_v23  ;;  %p147_p4 = scmp.lt.s32.totalorder %s141_s18, %s141_s18 }
  0xf7   :  { %p148_p5 = por %p147_p4, %p146_p3 }
  0xf9   :  { %p149_p6 = pnand %p148_p5, %p142_p2 }
  0xfb   :  { %152 = shalt.err (!%p149_p6)
}
  0xfc   :  { %s153_s21 = scalar_lea.hbm %s243_s4, 128 }
  0xfd   :  { %p154_p7 = scmp.ne.s32.totalorder %s243_s4, %s153_s21  ;;  %p157_p8 = scmp.lt.u32.totalorder %s153_s21, %s243_s4 }
  0xff   :  { %p159_p9 = pnand %p157_p8, %p154_p7 }
 0x101   :  { %162 = shalt.err (!%p159_p9)
}
 0x102   :  { %80 = dma.vmem_to_hbm [thread:$0]  %s78_s6, 128, %s243_s4, [#allocation7]  }
 0x103   :  { %165 = dma.done.wait [#allocation4], 128  }
 0x104   :  { %166 = vsyncadd [#allocation4], 4294967168 }
 0x105   :  { %167 = dma.done.wait [#allocation7], 128  }
 0x106   :  { %168 = vsyncadd [#allocation7], 4294967168 }
 0x107   :  { %87 = vsyncpa [#allocation3], 1 }
 0x108   :  { %88 = vsyncpa [#allocation4], 1 }
 0x109   :  { %89 = vsyncpa [#allocation7], 1 }

</bundles_post_ra>
